<compile_context>
chip_gen: v7x
topology: tpu7x:2x2x1
jax: 0.10.0
libtpu: 0.0.40
codegen_flags: <defaults>
</compile_context>

<pallas_src>
import jax
import jax.numpy as jnp
from jax.experimental import pallas as pl
from jax.experimental.pallas import tpu as pltpu

_LANE = 128        # lane width: pad hidden/action weight dims to this
_SUBLANE_BF16 = 16 # bf16 vreg is (16, 128): batch tile is a multiple of this


def _round_up(n, m):
    return ((n + m - 1) // m) * m


# ---------------------------------------------------------------------------
# Kernel: one batch tile, all four layers fused (activations stay on-chip).
# ---------------------------------------------------------------------------
def _dqn_kernel(x_ref,
                w1_ref, b1_ref,
                w2_ref, b2_ref,
                w3_ref, b3_ref,
                w4_ref, b4_ref,
                o_ref):
    # fc1 + relu in f32 (x unpadded on lanes; dropout eval mode -> identity)
    h = jnp.dot(x_ref[...], w1_ref[...],
                preferred_element_type=jnp.float32) + b1_ref[...]
    h = jnp.maximum(h, 0.0)

    # fc2 + relu, bf16 operands / f32 accumulate (dropout eval -> identity)
    h = jnp.dot(h.astype(jnp.bfloat16), w2_ref[...],
                preferred_element_type=jnp.float32) + b2_ref[...]
    h = jnp.maximum(h, 0.0)

    # fc3 + relu, bf16 operands / f32 accumulate
    h = jnp.dot(h.astype(jnp.bfloat16), w3_ref[...],
                preferred_element_type=jnp.float32) + b3_ref[...]
    h = jnp.maximum(h, 0.0)

    # fc4 in f32 (Q-value precision); write only the real action lanes
    out = jnp.dot(h, w4_ref[...],
                  preferred_element_type=jnp.float32) + b4_ref[...]
    o_ref[...] = out[:, :o_ref.shape[-1]].astype(o_ref.dtype)


# ---------------------------------------------------------------------------
# Param handling
# ---------------------------------------------------------------------------
def init_params(key, state_size, action_size, hidden_size):
    """nn.Linear-style uniform(-1/sqrt(fan_in), 1/sqrt(fan_in)) init.
    Weights stored transposed vs PyTorch, i.e. (in, out), biases (1, out)."""
    dims = [(state_size, hidden_size),
            (hidden_size, hidden_size),
            (hidden_size, hidden_size),
            (hidden_size, action_size)]
    params = {}
    keys = jax.random.split(key, 2 * len(dims))
    for i, (fan_in, fan_out) in enumerate(dims):
        bound = 1.0 / jnp.sqrt(jnp.float32(fan_in))
        params[f"w{i+1}"] = jax.random.uniform(
            keys[2 * i], (fan_in, fan_out), jnp.float32, -bound, bound)
        params[f"b{i+1}"] = jax.random.uniform(
            keys[2 * i + 1], (1, fan_out), jnp.float32, -bound, bound)
    return params


def prepare_params(params):
    """Pad hidden/action dims to lane multiples. fc1/fc4 stay f32 (input and
    Q-value precision); fc2/fc3 weights in bf16 (MXU-native, halves DMA).
    Zero padding is exact: padded rows/cols contribute 0."""
    w1, b1 = params["w1"], params["b1"]
    w2, b2 = params["w2"], params["b2"]
    w3, b3 = params["w3"], params["b3"]
    w4, b4 = params["w4"], params["b4"]
    H = w1.shape[1]
    A = w4.shape[1]
    H_pad = _round_up(H, _LANE)
    A_pad = _round_up(A, _LANE)
    return {
        # K of w1 stays at the true state_size -> x needs no lane padding.
        "w1": jnp.pad(w1, ((0, 0), (0, H_pad - H))).astype(jnp.float32),
        "b1": jnp.pad(b1, ((0, 0), (0, H_pad - H))).astype(jnp.float32),
        "w2": jnp.pad(w2, ((0, H_pad - H), (0, H_pad - H))).astype(jnp.bfloat16),
        "b2": jnp.pad(b2, ((0, 0), (0, H_pad - H))).astype(jnp.float32),
        "w3": jnp.pad(w3, ((0, H_pad - H), (0, H_pad - H))).astype(jnp.bfloat16),
        "b3": jnp.pad(b3, ((0, 0), (0, H_pad - H))).astype(jnp.float32),
        "w4": jnp.pad(w4, ((0, H_pad - H), (0, A_pad - A))).astype(jnp.float32),
        "b4": jnp.pad(b4, ((0, 0), (0, A_pad - A))).astype(jnp.float32),
    }


# ---------------------------------------------------------------------------
# Wrapper
# ---------------------------------------------------------------------------
def dqn_forward(x, padded_params, action_size, *, block_batch=512):
    """x: (B, state_size) float32. padded_params: output of prepare_params."""
    B, S = x.shape
    H_pad = padded_params["w1"].shape[1]
    A_pad = padded_params["w4"].shape[1]

    # Number of grid steps: cover B at <= block_batch rows per step, and use
    # >= 2 steps when B is big enough so the "parallel" axis can shard across
    # both TensorCores on v7x (no-op on single-TC v5e/v6e).
    min_steps = 2 if B >= 2 * _SUBLANE_BF16 else 1
    steps = max(pl.cdiv(B, block_batch), min_steps)
    tb = _round_up(pl.cdiv(B, steps), _SUBLANE_BF16)
    steps = pl.cdiv(B, tb)
    B_pad = steps * tb

    # Only the batch dim is padded (no lane padding, no dtype cast).
    x_p = jnp.pad(x.astype(jnp.float32), ((0, B_pad - B), (0, 0)))

    args = (x_p,
            padded_params["w1"], padded_params["b1"],
            padded_params["w2"], padded_params["b2"],
            padded_params["w3"], padded_params["b3"],
            padded_params["w4"], padded_params["b4"])

    # x/out march over the batch; weights/biases stay resident ((0,0) block).
    in_specs = ([pl.BlockSpec((tb, S), lambda i: (i, 0))] +
                [pl.BlockSpec(a.shape, lambda i: (0, 0)) for a in args[1:]])
    out_specs = pl.BlockSpec((tb, action_size), lambda i: (i, 0))

    flops = 2 * B_pad * (S * H_pad + 2 * H_pad * H_pad + H_pad * A_pad)
    bytes_accessed = (x_p.size * x_p.dtype.itemsize
                      + sum(a.size * a.dtype.itemsize for a in args[1:])
                      + B_pad * action_size * 4)
    cost = pl.CostEstimate(flops=flops, transcendentals=0,
                           bytes_accessed=bytes_accessed)

    out = pl.pallas_call(
        _dqn_kernel,
        out_shape=jax.ShapeDtypeStruct((B_pad, action_size), jnp.float32),
        grid=(steps,),
        in_specs=in_specs,
        out_specs=out_specs,
        compiler_params=pltpu.CompilerParams(
            dimension_semantics=("parallel",)),
        cost_estimate=cost,
    )(*args)

    return out[:B, :]


# ---------------------------------------------------------------------------
# Pure-f32 JAX reference of the original PyTorch module (eval mode)
# ---------------------------------------------------------------------------
def reference_forward(x, params):
    h = x.astype(jnp.float32)
    for i in range(1, 4):
        h = jnp.maximum(jnp.dot(h, params[f"w{i}"]) + params[f"b{i}"], 0.0)
    return jnp.dot(h, params["w4"]) + params["b4"]


if __name__ == "__main__":
    state_size, action_size, hidden_size = 16, 4, 128  # hidden matches spec default

    key = jax.random.PRNGKey(0)
    kx, kp = jax.random.split(key)

    params = init_params(kp, state_size, action_size, hidden_size)
    padded = prepare_params(params)

    # Small single-tile batch and a multi-step (2 grid blocks, padded) batch.
    for batch in (8, 48):
        x = jax.random.normal(jax.random.fold_in(kx, batch),
                              (batch, state_size), jnp.float32)
        out = jax.block_until_ready(dqn_forward(x, padded, action_size))
        ref = reference_forward(x, params)
        assert out.shape == (batch, action_size)
        assert jnp.allclose(out, ref, atol=5e-2, rtol=5e-2), \
            f"mismatch vs f32 reference (B={batch})"

    print("KERNEL_OK")
</pallas_src>

<mosaic_0001>
module attributes {stable_mosaic.version = 11 : i64} {
  func.func @_dqn_kernel(%arg0: i32, %arg1: memref<16x16xf32, #tpu.memory_space<vmem>>, %arg2: memref<16x128xf32, #tpu.memory_space<vmem>>, %arg3: memref<1x128xf32, #tpu.memory_space<vmem>>, %arg4: memref<128x128xbf16, #tpu.memory_space<vmem>>, %arg5: memref<1x128xf32, #tpu.memory_space<vmem>>, %arg6: memref<128x128xbf16, #tpu.memory_space<vmem>>, %arg7: memref<1x128xf32, #tpu.memory_space<vmem>>, %arg8: memref<128x128xf32, #tpu.memory_space<vmem>>, %arg9: memref<1x128xf32, #tpu.memory_space<vmem>>, %arg10: memref<16x4xf32, #tpu.memory_space<vmem>>) attributes {dimension_semantics = [#tpu.dimension_semantics<parallel>], iteration_bounds = array<i64: 1>, scalar_prefetch = 0 : i64, scratch_operands = 0 : i64, tpu.core_type = #tpu.core_type<tc>, window_params = [{transform_indices = @transform_0, window_bounds = array<i64: 16, 16>}, {pipeline_mode = #tpu.pipeline_mode<synchronous>, transform_indices = @transform_1, window_bounds = array<i64: 16, 128>}, {pipeline_mode = #tpu.pipeline_mode<synchronous>, transform_indices = @transform_2, window_bounds = array<i64: 1, 128>}, {pipeline_mode = #tpu.pipeline_mode<synchronous>, transform_indices = @transform_3, window_bounds = array<i64: 128, 128>}, {pipeline_mode = #tpu.pipeline_mode<synchronous>, transform_indices = @transform_4, window_bounds = array<i64: 1, 128>}, {pipeline_mode = #tpu.pipeline_mode<synchronous>, transform_indices = @transform_5, window_bounds = array<i64: 128, 128>}, {pipeline_mode = #tpu.pipeline_mode<synchronous>, transform_indices = @transform_6, window_bounds = array<i64: 1, 128>}, {pipeline_mode = #tpu.pipeline_mode<synchronous>, transform_indices = @transform_7, window_bounds = array<i64: 128, 128>}, {pipeline_mode = #tpu.pipeline_mode<synchronous>, transform_indices = @transform_8, window_bounds = array<i64: 1, 128>}, {transform_indices = @transform_9, window_bounds = array<i64: 16, 4>}]} {
    %c0 = arith.constant 0 : index
    %c0_0 = arith.constant 0 : index
    %0 = vector.load %arg1[%c0, %c0_0] : memref<16x16xf32, #tpu.memory_space<vmem>>, vector<16x16xf32>
    %c0_1 = arith.constant 0 : index
    %c0_2 = arith.constant 0 : index
    %1 = vector.load %arg2[%c0_1, %c0_2] : memref<16x128xf32, #tpu.memory_space<vmem>>, vector<16x128xf32>
    %cst = arith.constant dense<0.000000e+00> : vector<16x128xf32>
    %2 = tpu.matmul %0, %1, %cst {dimension_numbers = #tpu.dot_dimension_numbers<[1], [0], [0], [1], [0, 0, 1, 1], [], []>} : vector<16x16xf32>, vector<16x128xf32>, vector<16x128xf32> -> vector<16x128xf32>
    %c0_3 = arith.constant 0 : index
    %c0_4 = arith.constant 0 : index
    %3 = vector.load %arg3[%c0_3, %c0_4] : memref<1x128xf32, #tpu.memory_space<vmem>>, vector<1x128xf32>
    %4 = vector.broadcast %3 : vector<1x128xf32> to vector<16x128xf32>
    %5 = arith.addf %2, %4 : vector<16x128xf32>
    %cst_5 = arith.constant 0.000000e+00 : f32
    %6 = vector.broadcast %cst_5 : f32 to vector<16x128xf32>
    %7 = arith.maximumf %5, %6 : vector<16x128xf32>
    %8 = arith.truncf %7 : vector<16x128xf32> to vector<16x128xbf16>
    %c0_6 = arith.constant 0 : index
    %c0_7 = arith.constant 0 : index
    %9 = vector.load %arg4[%c0_6, %c0_7] : memref<128x128xbf16, #tpu.memory_space<vmem>>, vector<128x128xbf16>
    %cst_8 = arith.constant dense<0.000000e+00> : vector<16x128xf32>
    %10 = tpu.matmul %8, %9, %cst_8 {dimension_numbers = #tpu.dot_dimension_numbers<[1], [0], [0], [1], [0, 0, 1, 1], [], []>} : vector<16x128xbf16>, vector<128x128xbf16>, vector<16x128xf32> -> vector<16x128xf32>
    %c0_9 = arith.constant 0 : index
    %c0_10 = arith.constant 0 : index
    %11 = vector.load %arg5[%c0_9, %c0_10] : memref<1x128xf32, #tpu.memory_space<vmem>>, vector<1x128xf32>
    %12 = vector.broadcast %11 : vector<1x128xf32> to vector<16x128xf32>
    %13 = arith.addf %10, %12 : vector<16x128xf32>
    %cst_11 = arith.constant 0.000000e+00 : f32
    %14 = vector.broadcast %cst_11 : f32 to vector<16x128xf32>
    %15 = arith.maximumf %13, %14 : vector<16x128xf32>
    %16 = arith.truncf %15 : vector<16x128xf32> to vector<16x128xbf16>
    %c0_12 = arith.constant 0 : index
    %c0_13 = arith.constant 0 : index
    %17 = vector.load %arg6[%c0_12, %c0_13] : memref<128x128xbf16, #tpu.memory_space<vmem>>, vector<128x128xbf16>
    %cst_14 = arith.constant dense<0.000000e+00> : vector<16x128xf32>
    %18 = tpu.matmul %16, %17, %cst_14 {dimension_numbers = #tpu.dot_dimension_numbers<[1], [0], [0], [1], [0, 0, 1, 1], [], []>} : vector<16x128xbf16>, vector<128x128xbf16>, vector<16x128xf32> -> vector<16x128xf32>
    %c0_15 = arith.constant 0 : index
    %c0_16 = arith.constant 0 : index
    %19 = vector.load %arg7[%c0_15, %c0_16] : memref<1x128xf32, #tpu.memory_space<vmem>>, vector<1x128xf32>
    %20 = vector.broadcast %19 : vector<1x128xf32> to vector<16x128xf32>
    %21 = arith.addf %18, %20 : vector<16x128xf32>
    %cst_17 = arith.constant 0.000000e+00 : f32
    %22 = vector.broadcast %cst_17 : f32 to vector<16x128xf32>
    %23 = arith.maximumf %21, %22 : vector<16x128xf32>
    %c0_18 = arith.constant 0 : index
    %c0_19 = arith.constant 0 : index
    %24 = vector.load %arg8[%c0_18, %c0_19] : memref<128x128xf32, #tpu.memory_space<vmem>>, vector<128x128xf32>
    %cst_20 = arith.constant dense<0.000000e+00> : vector<16x128xf32>
    %25 = tpu.matmul %23, %24, %cst_20 {dimension_numbers = #tpu.dot_dimension_numbers<[1], [0], [0], [1], [0, 0, 1, 1], [], []>} : vector<16x128xf32>, vector<128x128xf32>, vector<16x128xf32> -> vector<16x128xf32>
    %c0_21 = arith.constant 0 : index
    %c0_22 = arith.constant 0 : index
    %26 = vector.load %arg9[%c0_21, %c0_22] : memref<1x128xf32, #tpu.memory_space<vmem>>, vector<1x128xf32>
    %27 = vector.broadcast %26 : vector<1x128xf32> to vector<16x128xf32>
    %28 = arith.addf %25, %27 : vector<16x128xf32>
    %29 = vector.extract_strided_slice %28 {offsets = [0, 0], sizes = [16, 4], strides = [1, 1]} : vector<16x128xf32> to vector<16x4xf32>
    %c0_23 = arith.constant 0 : index
    %c0_24 = arith.constant 0 : index
    %30 = vector.load %arg10[%c0_23, %c0_24] : memref<16x4xf32, #tpu.memory_space<vmem>>, vector<16x4xf32>
    tpu.vector_store %arg10[%c0_23, %c0_24], %29 {strides = array<i32>} : memref<16x4xf32, #tpu.memory_space<vmem>>, vector<16x4xf32>,
    return
  }
  func.func @transform_0(%arg0: i32) -> (i32, i32) {
    %c0_i32 = arith.constant 0 : i32
    %c0_i32_0 = arith.constant 0 : i32
    return %arg0, %c0_i32 : i32, i32
  }
  func.func @transform_1(%arg0: i32) -> (i32, i32) {
    %c0_i32 = arith.constant 0 : i32
    %c0_i32_0 = arith.constant 0 : i32
    %c0_i32_1 = arith.constant 0 : i32
    return %c0_i32, %c0_i32_0 : i32, i32
  }
  func.func @transform_2(%arg0: i32) -> (i32, i32) {
    %c0_i32 = arith.constant 0 : i32
    %c0_i32_0 = arith.constant 0 : i32
    %c0_i32_1 = arith.constant 0 : i32
    return %c0_i32, %c0_i32_0 : i32, i32
  }
  func.func @transform_3(%arg0: i32) -> (i32, i32) {
    %c0_i32 = arith.constant 0 : i32
    %c0_i32_0 = arith.constant 0 : i32
    %c0_i32_1 = arith.constant 0 : i32
    return %c0_i32, %c0_i32_0 : i32, i32
  }
  func.func @transform_4(%arg0: i32) -> (i32, i32) {
    %c0_i32 = arith.constant 0 : i32
    %c0_i32_0 = arith.constant 0 : i32
    %c0_i32_1 = arith.constant 0 : i32
    return %c0_i32, %c0_i32_0 : i32, i32
  }
  func.func @transform_5(%arg0: i32) -> (i32, i32) {
    %c0_i32 = arith.constant 0 : i32
    %c0_i32_0 = arith.constant 0 : i32
    %c0_i32_1 = arith.constant 0 : i32
    return %c0_i32, %c0_i32_0 : i32, i32
  }
  func.func @transform_6(%arg0: i32) -> (i32, i32) {
    %c0_i32 = arith.constant 0 : i32
    %c0_i32_0 = arith.constant 0 : i32
    %c0_i32_1 = arith.constant 0 : i32
    return %c0_i32, %c0_i32_0 : i32, i32
  }
  func.func @transform_7(%arg0: i32) -> (i32, i32) {
    %c0_i32 = arith.constant 0 : i32
    %c0_i32_0 = arith.constant 0 : i32
    %c0_i32_1 = arith.constant 0 : i32
    return %c0_i32, %c0_i32_0 : i32, i32
  }
  func.func @transform_8(%arg0: i32) -> (i32, i32) {
    %c0_i32 = arith.constant 0 : i32
    %c0_i32_0 = arith.constant 0 : i32
    %c0_i32_1 = arith.constant 0 : i32
    return %c0_i32, %c0_i32_0 : i32, i32
  }
  func.func @transform_9(%arg0: i32) -> (i32, i32) {
    %c0_i32 = arith.constant 0 : i32
    %c0_i32_0 = arith.constant 0 : i32
    return %arg0, %c0_i32 : i32, i32
  }
}

</mosaic_0001>

<bundles_post_ra>
// kernel: tpu_custom_call.1
= control target key start
LH: loop header
LB: loop body
LE: loop exit
PB: predicated region body
PF: predicated region fallthrough
CT: control target
= control target key end

     0   :  { %14 = vsyncpa [#allocation3], 0  ;;  %s1029_s0 = inlined_call_operand.hbm [shape: f32[16,16], index: 0, kind: input, shape index: {}]   ;;  %s1030_s1 = inlined_call_operand.hbm [shape: f32[16,128], index: 1, kind: input, shape index: {}]   ;;  %s1031_s2 = inlined_call_operand.vmem [shape: f32[1,128], index: 2, kind: input, shape index: {}]   ;;  %s1032_s3 = inlined_call_operand.hbm [shape: bf16[128,128], index: 3, kind: input, shape index: {}]   ;;  %s1033_s4 = inlined_call_operand.vmem [shape: f32[1,128], index: 4, kind: input, shape index: {}]   ;;  %s1034_s5 = inlined_call_operand.hbm [shape: bf16[128,128], index: 5, kind: input, shape index: {}]   ;;  %s1035_s6 = inlined_call_operand.vmem [shape: f32[1,128], index: 6, kind: input, shape index: {}]   ;;  %s1036_s7 = inlined_call_operand.hbm [shape: f32[128,128], index: 7, kind: input, shape index: {}]   ;;  %s1037_s8 = inlined_call_operand.vmem [shape: f32[1,128], index: 8, kind: input, shape index: {}]   ;;  %s1038_s9 = inlined_call_operand.vmem [shape: f32[16,4], index: 9, kind: output, shape index: {}]  }
   0x1   :  { %15 = vsyncpa [#allocation5], 0 }
   0x2   :  { %16 = vsyncpa [#allocation8], 0  ;;  %s857_s30 = smov [#allocation4]   ;;  %s741_s13 = scalar_lea.hbm %s1030_s1, 256 }
   0x3   :  { %s34_s10 = sshll.u32 %s857_s30, 4  ;;  %p742_p0 = scmp.ne.s32.totalorder %s1030_s1, %s741_s13  ;;  %s35_s10 = int_to_ptr.vmem [resolvable:$true] %s34_s10 }
   0x4   :  { %p745_p1 = scmp.lt.u32.totalorder %s741_s13, %s1030_s1 }
   0x6   :  { %p747_p2 = pnand %p745_p1, %p742_p0 }
   0x8   :  { %750 = shalt.err (!%p747_p2)
}
   0x9   :  { %s751_s18 = scalar_lea.vmem %s35_s10, 256  ;;  %p756_p4 = scmp.lt.s32.totalorder %s35_s10, %s35_s10 }
   0xa   :  { %p752_p3 = scmp.ne.s32.totalorder %s35_s10, %s751_s18  ;;  %p757_p5 = scmp.lt.s32.totalorder %s751_s18, %s751_s18 }
   0xc   :  { %p758_p6 = por %p757_p5, %p756_p4 }
   0xe   :  { %p759_p7 = pnand %p758_p6, %p752_p3 }
  0x10   :  { %762 = shalt.err (!%p759_p7)
}
  0x11   :  { %s858_s19 = smov 128   ;;  %s859_s20 = smov 8  }
  0x12   :  { %40 = dma.hbm_to_vmem [thread:$0]  %s1030_s1, 256, %s35_s10, [#allocation5], %s858_s19, %s858_s19, %s859_s20  }
  0x13   :  { %s860_s23 = smov [#allocation7]   ;;  %s861_s25 = smov [#allocation2]  }
  0x14   :  { %s62_s24 = sshll.u32 %s860_s23, 4  ;;  %s22_s26 = sshll.u32 %s861_s25, 4  ;;  %s63_s24 = int_to_ptr.vmem [resolvable:$true] %s62_s24  ;;  %s23_s26 = int_to_ptr.vmem [resolvable:$true] %s22_s26 }
  0x15   :  { %s763_s29 = scalar_lea.hbm %s1034_s5, 1024 }
  0x16   :  { %p764_p8 = scmp.ne.s32.totalorder %s1034_s5, %s763_s29  ;;  %p767_p9 = scmp.lt.u32.totalorder %s763_s29, %s1034_s5 }
  0x18   :  { %p769_p10 = pnand %p767_p9, %p764_p8 }
  0x1a   :  { %772 = shalt.err (!%p769_p10)
}
  0x1b   :  { %s773_s1 = scalar_lea.vmem %s63_s24, 1024  ;;  %p778_p12 = scmp.lt.s32.totalorder %s63_s24, %s63_s24 }
  0x1c   :  { %p774_p11 = scmp.ne.s32.totalorder %s63_s24, %s773_s1  ;;  %p779_p13 = scmp.lt.s32.totalorder %s773_s1, %s773_s1 }
  0x1e   :  { %p780_p0 = por %p779_p13, %p778_p12 }
  0x20   :  { %p781_p1 = pnand %p780_p0, %p774_p11 }
  0x22   :  { %784 = shalt.err (!%p781_p1)
}
  0x23   :  { %s862_s10 = smov 64   ;;  %s863_s14 = smov 4  }
  0x24   :  { %68 = dma.hbm_to_vmem [thread:$0]  %s1034_s5, 1024, %s63_s24, [#allocation8], %s862_s10, %s862_s10, %s863_s14  }
  0x25   :  { %s785_s21 = scalar_lea.hbm %s1029_s0, 256 }
  0x26   :  { %p786_p2 = scmp.ne.s32.totalorder %s1029_s0, %s785_s21  ;;  %p789_p3 = scmp.lt.u32.totalorder %s785_s21, %s1029_s0 }
  0x28   :  { %p791_p4 = pnand %p789_p3, %p786_p2 }
  0x2a   :  { %794 = shalt.err (!%p791_p4)
}
  0x2b   :  { %s795_s28 = scalar_lea.vmem %s23_s26, 256  ;;  %p800_p6 = scmp.lt.s32.totalorder %s23_s26, %s23_s26 }
  0x2c   :  { %p796_p5 = scmp.ne.s32.totalorder %s23_s26, %s795_s28  ;;  %p801_p7 = scmp.lt.s32.totalorder %s795_s28, %s795_s28 }
  0x2e   :  { %p802_p8 = por %p801_p7, %p800_p6 }
  0x30   :  { %p803_p9 = pnand %p802_p8, %p796_p5 }
  0x32   :  { %806 = shalt.err (!%p803_p9)
}
  0x33   :  { %28 = dma.hbm_to_vmem [thread:$0]  %s1029_s0, 256, %s23_s26, [#allocation3], %s858_s19, %s858_s19, %s859_s20  }
  0x34   :  { %s864_s29 = smov [#allocation6]   ;;  %s865_s11 = smov [#allocation9]  }
  0x35   :  { %s48_s30 = sshll.u32 %s864_s29, 4  ;;  %s76_s12 = sshll.u32 %s865_s11, 4  ;;  %s49_s30 = int_to_ptr.vmem [resolvable:$true] %s48_s30  ;;  %s77_s12 = int_to_ptr.vmem [resolvable:$true] %s76_s12 }
  0x36   :  { %s807_s15 = scalar_lea.hbm %s1032_s3, 1024 }
  0x37   :  { %p808_p10 = scmp.ne.s32.totalorder %s1032_s3, %s807_s15  ;;  %p811_p11 = scmp.lt.u32.totalorder %s807_s15, %s1032_s3 }
  0x39   :  { %p813_p12 = pnand %p811_p11, %p808_p10 }
  0x3b   :  { %816 = shalt.err (!%p813_p12)
}
  0x3c   :  { %s817_s0 = scalar_lea.vmem %s49_s30, 1024  ;;  %p822_p0 = scmp.lt.s32.totalorder %s49_s30, %s49_s30 }
  0x3d   :  { %p818_p13 = scmp.ne.s32.totalorder %s49_s30, %s817_s0  ;;  %p823_p1 = scmp.lt.s32.totalorder %s817_s0, %s817_s0 }
  0x3f   :  { %p824_p2 = por %p823_p1, %p822_p0 }
  0x41   :  { %p825_p3 = pnand %p824_p2, %p818_p13 }
  0x43   :  { %828 = shalt.err (!%p825_p3)
}
  0x44   :  { %54 = dma.hbm_to_vmem [thread:$0]  %s1032_s3, 1024, %s49_s30, [#allocation5], %s862_s10, %s862_s10, %s863_s14  }
  0x45   :  { %s829_s27 = scalar_lea.hbm %s1036_s7, 2048 }
  0x46   :  { %p830_p4 = scmp.ne.s32.totalorder %s1036_s7, %s829_s27  ;;  %p833_p5 = scmp.lt.u32.totalorder %s829_s27, %s1036_s7 }
  0x48   :  { %p835_p6 = pnand %p833_p5, %p830_p4 }
  0x4a   :  { %838 = shalt.err (!%p835_p6)
}
  0x4b   :  { %s839_s11 = scalar_lea.vmem %s77_s12, 2048  ;;  %p844_p8 = scmp.lt.s32.totalorder %s77_s12, %s77_s12 }
  0x4c   :  { %p840_p7 = scmp.ne.s32.totalorder %s77_s12, %s839_s11  ;;  %p845_p9 = scmp.lt.s32.totalorder %s839_s11, %s839_s11 }
  0x4e   :  { %p846_p10 = por %p845_p9, %p844_p8 }
  0x50   :  { %p847_p11 = pnand %p846_p10, %p840_p7 }
  0x52   :  { %850 = shalt.err (!%p847_p11)
}
  0x53   :  { %82 = dma.hbm_to_vmem [thread:$0]  %s1036_s7, 2048, %s77_s12, [#allocation8], %s858_s19, %s858_s19, %s859_s20  }
  0x54   :  { %851 = dma.done.wait [#allocation3], 256  }
  0x55   :  { %852 = vsyncadd [#allocation3], 4294967040 }
  0x56   :  { %853 = dma.done.wait [#allocation5], 1280  }
  0x57   :  { %854 = vsyncadd [#allocation5], 4294966016 }
  0x58   :  { %855 = dma.done.wait [#allocation8], 3072  }
  0x59   :  { %856 = vsyncadd [#allocation8], 4294964224  ;;  %v866_v0 = vmov 0.0   ;;  %vm112_vm0 = vcmask 130048   ;;  %v103_v1 = vld [vmem:[#allocation4] sm:$0xff]  ;;  %v104_v2 = vld [vmem:[#allocation4 + $0x8] sm:$0xff] }
  0x5a   :  { %603 = vmatprep.subr.bf16.mxu1 %v866_v0  ;;  %v101_v3 = vld [vmem:[#allocation2] sm:$0xff]  ;;  %v678_v4 = vpack.c.bf16 %v104_v2, %v103_v1  ;;  %v102_v6 = vld [vmem:[#allocation2 + $0x8] sm:$0xff]  ;;  %v727_v8 = vld [vmem:[#allocation6 + $0x10] sm:$0xff]   ;;  %vm867_vm1 = vmmov 0   ;;  %vm524_vm2 = vcmask 31744  }
  0x5b   :  { %600 = vmatprep.mubr.msk.f32.mxu0 %vm112_vm0, %v101_v3  ;;  %v725_v5 = vld [vmem:[#allocation6] sm:$0xff]   ;;  %v726_v7 = vld [vmem:[#allocation6 + $0x8] sm:$0xff]   ;;  %v728_v9 = vld [vmem:[#allocation6 + $0x18] sm:$0xff]   ;;  %619 = vmatprep.mubr.msk.bf16.mxu1 %vm867_vm1, %v866_v0 }
  0x5c   :  { %679 = vmatprep.subr.bf16.mxu0 %v678_v4  ;;  %604 = vmatpush3.bf16.msra.mxu1 %v725_v5  ;;  %v729_v10 = vld [vmem:[#allocation6 + $0x20] sm:$0xff]   ;;  %v730_v11 = vld [vmem:[#allocation6 + $0x28] sm:$0xff]   ;;  %v731_v12 = vld [vmem:[#allocation6 + $0x30] sm:$0xff]  }
  0x5d   :  { %681 = vmatpush3.bf16.msra.mxu0 %v678_v4  ;;  %605 = vmatprep.subr.bf16.mxu1 %v866_v0  ;;  %v732_v13 = vld [vmem:[#allocation6 + $0x38] sm:$0xff]   ;;  %v733_v14 = vld [vmem:[#allocation7] sm:$0xff]   ;;  %v734_v15 = vld [vmem:[#allocation7 + $0x8] sm:$0xff]  }
  0x5e   :  { %623 = vmatprep.subr.bf16.mxu0 %v866_v0  ;;  %v735_v16 = vld [vmem:[#allocation7 + $0x10] sm:$0xff]   ;;  %v736_v17 = vld [vmem:[#allocation7 + $0x18] sm:$0xff]   ;;  %v737_v18 = vld [vmem:[#allocation7 + $0x20] sm:$0xff]  }
  0x5f   :  { %v738_v19 = vld [vmem:[#allocation7 + $0x28] sm:$0xff]   ;;  %v534_v20 = vld [vmem:[%s1031_s2] ss:$0 sm:$0xff]  ;;  %v740_v29 = vld [vmem:[#allocation7 + $0x38] sm:$0xff]  }
  0x60   :  { %601 = vmatmul.mubr.msk.f32.vlgmr.msra.gmra.mrb[0].mxu0 %vm112_vm0, %v102_v6  ;;  %606 = vmatpush3.bf16.msra.mxu1 %v726_v7  ;;  %v739_v28 = vld [vmem:[#allocation7 + $0x30] sm:$0xff]   ;;  %v426_v30 = vld [vmem:[#allocation9] sm:$0xff]  ;;  %v427_v31 = vld [vmem:[#allocation9 + $0x8] sm:$0xff] }
  0x61   :  { %607 = vmatprep.subr.bf16.mxu1 %v866_v0  ;;  %639 = vmatprep.mubr.msk.bf16.mxu0 %vm867_vm1, %v866_v0  ;;  %v428_v32 = vld [vmem:[#allocation9 + $0x10] sm:$0xff]  ;;  %v682_v33 = vpack.c.bf16 %v427_v31, %v426_v30  ;;  %v429_v34 = vld [vmem:[#allocation9 + $0x18] sm:$0xff]  ;;  %v430_v36 = vld [vmem:[#allocation9 + $0x20] sm:$0xff] }
  0x62   :  { %624 = vmatpush3.bf16.msra.mxu0 %v733_v14  ;;  %v686_v35 = vpack.c.bf16 %v429_v34, %v428_v32  ;;  %v431_v37 = vld [vmem:[#allocation9 + $0x28] sm:$0xff]  ;;  %v432_v39 = vld [vmem:[#allocation9 + $0x30] sm:$0xff]  ;;  %v433_v40 = vld [vmem:[#allocation9 + $0x38] sm:$0xff] }
  0x63   :  { %625 = vmatprep.subr.bf16.mxu0 %v866_v0  ;;  %v690_v38 = vpack.c.bf16 %v431_v37, %v430_v36  ;;  %v694_v41 = vpack.c.bf16 %v433_v40, %v432_v39  ;;  %v434_v42 = vld [vmem:[#allocation9 + $0x40] sm:$0xff]  ;;  %v435_v43 = vld [vmem:[#allocation9 + $0x48] sm:$0xff]  ;;  %v436_v45 = vld [vmem:[#allocation9 + $0x50] sm:$0xff] }
  0x64   :  { %608 = vmatpush3.bf16.msra.mxu1 %v727_v8  ;;  %v698_v44 = vpack.c.bf16 %v435_v43, %v434_v42  ;;  %v437_v46 = vld [vmem:[#allocation9 + $0x58] sm:$0xff]  ;;  %v438_v48 = vld [vmem:[#allocation9 + $0x60] sm:$0xff]  ;;  %v439_v49 = vld [vmem:[#allocation9 + $0x68] sm:$0xff] }
  0x65   :  { %609 = vmatprep.subr.bf16.mxu1 %v866_v0  ;;  %v702_v47 = vpack.c.bf16 %v437_v46, %v436_v45  ;;  %v706_v50 = vpack.c.bf16 %v439_v49, %v438_v48  ;;  %v537_v51 = vld [vmem:[%s1033_s4] ss:$0 sm:$0xff]  ;;  %v441_v62 = vld [vmem:[#allocation9 + $0x78] sm:$0xff] }
  0x66   :  { %626 = vmatpush3.bf16.msra.mxu0 %v734_v15  ;;  %v440_v61 = vld [vmem:[#allocation9 + $0x70] sm:$0xff] }
  0x67   :  { %627 = vmatprep.subr.bf16.mxu0 %v866_v0  ;;  %v710_v63 = vpack.c.bf16 %v441_v62, %v440_v61 }
  0x68   :  { %610 = vmatpush3.bf16.msra.mxu1 %v728_v9  ;;  %v555_v9 = vld [vmem:[%s1037_s8] ss:$0 sm:$0xff] }
  0x69   :  { %611 = vmatprep.subr.bf16.mxu1 %v866_v0 }
  0x6a   :  { %628 = vmatpush3.bf16.msra.mxu0 %v735_v16 }
  0x6b   :  { %629 = vmatprep.subr.bf16.mxu0 %v866_v0 }
  0x6c   :  { %612 = vmatpush3.bf16.msra.mxu1 %v729_v10 }
  0x6d   :  { %613 = vmatprep.subr.bf16.mxu1 %v866_v0 }
  0x6e   :  { %630 = vmatpush3.bf16.msra.mxu0 %v736_v17 }
  0x6f   :  { %631 = vmatprep.subr.bf16.mxu0 %v866_v0 }
  0x70   :  { %614 = vmatpush3.bf16.msra.mxu1 %v730_v11 }
  0x71   :  { %615 = vmatprep.subr.bf16.mxu1 %v866_v0 }
  0x72   :  { %632 = vmatpush3.bf16.msra.mxu0 %v737_v18 }
  0x73   :  { %633 = vmatprep.subr.bf16.mxu0 %v866_v0 }
  0x74   :  { %616 = vmatpush3.bf16.msra.mxu1 %v731_v12 }
  0x75   :  { %617 = vmatprep.subr.bf16.mxu1 %v866_v0 }
  0x76   :  { %634 = vmatpush3.bf16.msra.mxu0 %v738_v19 }
  0x77   :  { %635 = vmatprep.subr.bf16.mxu0 %v866_v0 }
  0x78   :  { %618 = vmatpush3.bf16.msra.mxu1 %v732_v13 }
  0x79   :  { %683 = vmatprep.subr.bf16.mxu1 %v682_v33 }
  0x7a   :  { %636 = vmatpush3.bf16.msra.mxu0 %v739_v28 }
  0x7b   :  { %637 = vmatprep.subr.bf16.mxu0 %v866_v0  ;;  %v546_v0 = vld [vmem:[%s1035_s6] ss:$0 sm:$0xff] }
  0x7e   :  { %638 = vmatpush3.bf16.msra.mxu0 %v740_v29 }
 0x133   :  { %v602_v21 = vpop.f32.mrb[0].mxu0 }
 0x134   :  { %v191_v22 = vadd.f32 %v602_v21, %v534_v20  ;;  %v185_v23 = vpop.f32.mrb[1].mxu0 }
 0x135   :  { %v186_v24 = vadd.f32 %v534_v20, %v185_v23 }
 0x136   :  { %v195_v25 = vmax.f32 %v191_v22, 0.0 }
 0x137   :  { %v194_v26 = vmax.f32 %v186_v24, 0.0 }
 0x139   :  { %v196_v27 = vpack.c.bf16 %v195_v25, %v194_v26 }
 0x13b   :  { %620 = vmatmul.mubr.bf16.vlgmr.msra.gmra.mrb[0].mxu1 %v196_v27 }
 0x13c   :  { %685 = vmatpush3.bf16.msra.mxu1 %v682_v33 }
 0x13d   :  { %687 = vmatprep.subr.bf16.mxu1 %v686_v35 }
 0x140   :  { %689 = vmatpush3.bf16.msra.mxu1 %v686_v35 }
 0x141   :  { %691 = vmatprep.subr.bf16.mxu1 %v690_v38 }
 0x144   :  { %693 = vmatpush3.bf16.msra.mxu1 %v690_v38 }
 0x145   :  { %695 = vmatprep.subr.bf16.mxu1 %v694_v41 }
 0x148   :  { %697 = vmatpush3.bf16.msra.mxu1 %v694_v41 }
 0x149   :  { %699 = vmatprep.subr.bf16.mxu1 %v698_v44 }
 0x14c   :  { %701 = vmatpush3.bf16.msra.mxu1 %v698_v44 }
 0x14d   :  { %703 = vmatprep.subr.bf16.mxu1 %v702_v47 }
 0x150   :  { %705 = vmatpush3.bf16.msra.mxu1 %v702_v47 }
 0x151   :  { %707 = vmatprep.subr.bf16.mxu1 %v706_v50 }
 0x154   :  { %709 = vmatpush3.bf16.msra.mxu1 %v706_v50 }
 0x155   :  { %711 = vmatprep.subr.bf16.mxu1 %v710_v63 }
 0x158   :  { %713 = vmatpush3.bf16.msra.mxu1 %v710_v63 }
 0x20e   :  { %v302_v52 = vpop.f32.mrb[0].mxu1 }
 0x20f   :  { %v303_v53 = vadd.f32 %v537_v51, %v302_v52  ;;  %v621_v54 = vpop.f32.mrb[1].mxu1 }
 0x210   :  { %v305_v55 = vpop.f32.mrb[2].mxu1 }
 0x211   :  { %v306_v56 = vadd.f32 %v537_v51, %v305_v55  ;;  %v622_v57 = vpop.f32.mrb[3].mxu1  ;;  %v309_v58 = vmax.f32 %v303_v53, 0.0 }
 0x213   :  { %v310_v59 = vmax.f32 %v306_v56, 0.0 }
 0x215   :  { %v311_v60 = vpack.c.bf16 %v310_v59, %v309_v58 }
 0x217   :  { %640 = vmatmul.mubr.bf16.vlgmr.msra.gmra.mrb[4].mxu0 %v311_v60 }
 0x2ea   :  { %v417_v1 = vpop.f32.mrb[4].mxu0 }
 0x2eb   :  { %v418_v2 = vadd.f32 %v546_v0, %v417_v1  ;;  %v641_v3 = vpop.f32.mrb[5].mxu0 }
 0x2ec   :  { %v420_v4 = vpop.f32.mrb[6].mxu0 }
 0x2ed   :  { %v424_v5 = vmax.f32 %v418_v2, 0.0  ;;  %v421_v6 = vadd.f32 %v546_v0, %v420_v4  ;;  %v642_v7 = vpop.f32.mrb[7].mxu0 }
 0x2ef   :  { %v425_v8 = vmax.f32 %v421_v6, 0.0  ;;  %675 = vmatprep.mubr.f32.mxu1 %v424_v5 }
 0x2f1   :  { %676 = vmatmul.mubr.f32.vlgmr.msra.gmra.mrb[4].mxu1 %v425_v8 }
 0x3c4   :  { %v677_v10 = vpop.f32.mrb[4].mxu1 }
 0x3c5   :  { %v521_v11 = vadd.f32 %v677_v10, %v555_v9  ;;  %v515_v12 = vpop.f32.mrb[5].mxu1 }
 0x3c6   :  { %v516_v13 = vadd.f32 %v555_v9, %v515_v12 }
 0x3c7   :  { %526 = vst.msk [vmem:[%s1038_s9 + $0x8] sm:$0xff] %vm524_vm2, %v521_v11 }
 0x3c8   :  { %525 = vst.msk [vmem:[%s1038_s9] sm:$0xff] %vm524_vm2, %v516_v13 }
 0x3c9   :  { %531 = vsyncpa [#allocation3], 1 }
 0x3ca   :  { %532 = vsyncpa [#allocation5], 1 }
 0x3cb   :  { %533 = vsyncpa [#allocation8], 1 }

</bundles_post_ra>
